<compile_context>
chip_gen: v6e
topology: v6e:2x2x1
jax: 0.10.0
libtpu: 0.0.40
codegen_flags: <defaults>
</compile_context>

<pallas_src>
import functools

import jax
import jax.numpy as jnp
from jax.experimental import pallas as pl
from jax.experimental.pallas import tpu as pltpu


_P_RESIDENT_BUDGET = 10 << 20   # bytes of (p_hi + p_lo) allowed to stay in VMEM


def _round_up(v, m):
    return (v + m - 1) // m * m


def _plan_node_tiling(n):
    """Pad node axis and pick adjacency tile sizes (TM rows x TK cols).

    TM and TK both divide npad.  For large graphs keep >= 2 row tiles so the
    'parallel' i axis can be sharded across both TensorCores on v7x.
    """
    if n <= 256:
        npad = _round_up(max(n, 1), 128)
        tm = tk = npad
    else:
        npad = _round_up(n, 512)
        tk = 512
        tm = 512 if npad >= 4096 else 256
    return npad, tm, tk


def _aggregate_vmem_limit(tm, tk, hpad, npad, p_resident):
    """Conservative VMEM estimate (+ headroom), capped at v7x's 64 MiB."""
    adj_b = 2 * tm * tk * 2            # double-buffered bf16 adjacency tile
    r_b = 2 * tm * hpad * 4            # double-buffered f32 root/bias tile
    o_b = 2 * tm * hpad * 4            # double-buffered f32 output tile
    if p_resident:
        p_b = 2 * (2 * npad * hpad * 2)   # hi+lo resident (count 2 buffers)
    else:
        p_b = 2 * (2 * tk * hpad * 2)
    est = adj_b + r_b + o_b + p_b
    return int(min(max(est + (8 << 20), 32 << 20), 64 << 20))


# --------------------------------------------------------------------------
# Projection kernel:  xw = x @ [W_rel | W_root]
#   p_hi + p_lo = bf16 hi/lo split of x @ W_rel   (feeds bf16 MXU later)
#   r           = x @ W_root + b                  (f32)
# --------------------------------------------------------------------------
def _project_kernel(x_ref, w_ref, b_ref, phi_ref, plo_ref, r_ref, *, hpad):
    xw = jnp.dot(x_ref[...], w_ref[...], preferred_element_type=jnp.float32)
    p = xw[:, :hpad]
    p_hi = p.astype(jnp.bfloat16)
    phi_ref[...] = p_hi
    plo_ref[...] = (p - p_hi.astype(jnp.float32)).astype(jnp.bfloat16)
    r_ref[...] = xw[:, hpad:] + b_ref[...]


def _project(x, w_fused, b, *, tm):
    npad, fpad = x.shape
    hpad = w_fused.shape[1] // 2
    kernel = functools.partial(_project_kernel, hpad=hpad)
    return pl.pallas_call(
        kernel,
        out_shape=(jax.ShapeDtypeStruct((npad, hpad), jnp.bfloat16),
                   jax.ShapeDtypeStruct((npad, hpad), jnp.bfloat16),
                   jax.ShapeDtypeStruct((npad, hpad), jnp.float32)),
        grid_spec=pltpu.PrefetchScalarGridSpec(
            num_scalar_prefetch=0,
            grid=(npad // tm,),
            in_specs=[
                pl.BlockSpec((tm, fpad), lambda i: (i, 0)),
                pl.BlockSpec((fpad, 2 * hpad), lambda i: (0, 0)),
                pl.BlockSpec((1, hpad), lambda i: (0, 0)),
            ],
            out_specs=(
                pl.BlockSpec((tm, hpad), lambda i: (i, 0)),
                pl.BlockSpec((tm, hpad), lambda i: (i, 0)),
                pl.BlockSpec((tm, hpad), lambda i: (i, 0)),
            ),
        ),
        compiler_params=pltpu.CompilerParams(dimension_semantics=("parallel",)),
        cost_estimate=pl.CostEstimate(
            flops=int(2 * npad * fpad * 2 * hpad),
            transcendentals=0,
            bytes_accessed=int(4 * npad * fpad + 4 * fpad * 2 * hpad
                               + 2 * 2 * npad * hpad + 4 * npad * hpad),
        ),
    )(x, w_fused, b)


# --------------------------------------------------------------------------
# Aggregation kernel:  out = A @ (p_hi + p_lo) + r   [+ relu]
#   bf16 x bf16 MXU matmuls with f32 accumulation directly into o_ref.
# --------------------------------------------------------------------------
def _aggregate_kernel(adj_ref, phi_ref, plo_ref, r_ref, o_ref, *,
                      tk, p_resident, apply_relu):
    k = pl.program_id(1)

    @pl.when(k == 0)
    def _():
        o_ref[...] = r_ref[...]       # root term + bias folds into the init

    if p_resident:
        kk = pl.multiple_of(k * tk, tk)
        phi = phi_ref[pl.ds(kk, tk), :]
        plo = plo_ref[pl.ds(kk, tk), :]
    else:
        phi = phi_ref[...]
        plo = plo_ref[...]

    adj = adj_ref[...]
    o_ref[...] += (jnp.dot(adj, phi, preferred_element_type=jnp.float32)
                   + jnp.dot(adj, plo, preferred_element_type=jnp.float32))

    if apply_relu:
        @pl.when(k == pl.num_programs(1) - 1)
        def _():
            o_ref[...] = jnp.maximum(o_ref[...], 0.0)


def _aggregate(adj, p_hi, p_lo, r, *, tm, tk, apply_relu):
    npad = adj.shape[0]
    hpad = p_hi.shape[1]
    n_ktiles = npad // tk

    # Keep p (hi+lo) resident in VMEM if it fits: constant block index => one
    # DMA total instead of re-streaming (npad/TM) times from HBM.
    p_resident = (2 * npad * hpad * 2) <= _P_RESIDENT_BUDGET
    if p_resident:
        def make_p_spec():
            return pl.BlockSpec((npad, hpad), lambda i, k: (0, 0))
    else:
        def make_p_spec():
            return pl.BlockSpec((tk, hpad), lambda i, k: (k, 0))

    if n_ktiles >= 4:
        # Deeper adj buffering keeps the DMA queue full on low-BW parts (v5e).
        adj_spec = pl.BlockSpec((tm, tk), lambda i, k: (i, k),
                                pipeline_mode=pl.Buffered(3))
    else:
        adj_spec = pl.BlockSpec((tm, tk), lambda i, k: (i, k))

    kernel = functools.partial(_aggregate_kernel, tk=tk,
                               p_resident=p_resident, apply_relu=apply_relu)
    p_reads = (2 * 2 * npad * hpad if p_resident
               else (npad // tm) * npad * hpad * 2 * 2)
    return pl.pallas_call(
        kernel,
        out_shape=jax.ShapeDtypeStruct((npad, hpad), jnp.float32),
        grid_spec=pltpu.PrefetchScalarGridSpec(
            num_scalar_prefetch=0,
            grid=(npad // tm, n_ktiles),
            in_specs=[
                adj_spec,                                       # bf16 adj tile
                make_p_spec(),                                  # p_hi
                make_p_spec(),                                  # p_lo
                pl.BlockSpec((tm, hpad), lambda i, k: (i, 0)),  # root + bias
            ],
            out_specs=pl.BlockSpec((tm, hpad), lambda i, k: (i, 0)),
        ),
        compiler_params=pltpu.CompilerParams(
            dimension_semantics=("parallel", "arbitrary"),
            vmem_limit_bytes=_aggregate_vmem_limit(tm, tk, hpad, npad,
                                                   p_resident)),
        cost_estimate=pl.CostEstimate(
            flops=int(2 * 2 * npad * npad * hpad),
            transcendentals=0,
            bytes_accessed=int(adj.size * 2 + p_reads
                               + r.size * 4 + npad * hpad * 4),
        ),
    )(adj, p_hi, p_lo, r)


def graph_conv_layer(x_pad, adj, w_fused, b, *, tm, tk, apply_relu):
    """One GraphConv layer on padded operands: A @ (x@W_rel) + x@W_root + b."""
    p_hi, p_lo, r = _project(x_pad, w_fused, b, tm=tm)
    return _aggregate(adj, p_hi, p_lo, r, tm=tm, tk=tk, apply_relu=apply_relu)


class GraphConvEncoderPallas:
    """Two GraphConv layers; forward runs the Pallas kernels above."""

    def __init__(self, key, in_channels, hidden_channels, out_channels):
        k1, k2, k3, k4, k5, k6 = jax.random.split(key, 6)

        def glorot(k, fan_in, fan_out):
            limit = jnp.sqrt(6.0 / (fan_in + fan_out))
            return jax.random.uniform(k, (fan_in, fan_out), jnp.float32,
                                      -limit, limit)

        def bias_init(k, fan_in, fan_out):
            limit = 1.0 / jnp.sqrt(jnp.float32(fan_in))
            return jax.random.uniform(k, (1, fan_out), jnp.float32,
                                      -limit, limit)

        self.in_channels = in_channels
        self.hidden_channels = hidden_channels
        self.out_channels = out_channels
        # conv1: lin_rel (bias) + lin_root (no bias)
        self.w1_rel = glorot(k1, in_channels, hidden_channels)
        self.w1_root = glorot(k2, in_channels, hidden_channels)
        self.b1 = bias_init(k5, in_channels, hidden_channels)
        # conv2
        self.w2_rel = glorot(k3, hidden_channels, out_channels)
        self.w2_root = glorot(k4, hidden_channels, out_channels)
        self.b2 = bias_init(k6, hidden_channels, out_channels)

    def __call__(self, x, edge_index):
        n, fin = x.shape
        hid = self.hidden_channels
        out = self.out_channels

        npad, tm, tk = _plan_node_tiling(n)
        fpad = _round_up(fin, 128)   # lane-dense feature / output dims
        hpad = _round_up(hid, 128)
        opad = _round_up(out, 128)

        # Dense padded [dst, src] adjacency built directly in bf16
        # (exact for integer edge multiplicities <= 256).
        adj = (jnp.zeros((npad, npad), jnp.bfloat16)
               .at[edge_index[1], edge_index[0]]
               .add(jnp.ones((edge_index.shape[1],), jnp.bfloat16)))

        # dropout(p=0.9): identity in eval/inference mode (see TODO above).
        x_pad = jnp.zeros((npad, fpad), jnp.float32).at[:n, :fin].set(x)

        def fuse_weights(w_rel, w_root, b, c_in, c_in_pad, c_out, c_out_pad):
            w = jnp.zeros((c_in_pad, 2 * c_out_pad), jnp.float32)
            w = (w.at[:c_in, :c_out].set(w_rel)
                  .at[:c_in, c_out_pad:c_out_pad + c_out].set(w_root))
            bp = jnp.zeros((1, c_out_pad), jnp.float32).at[:, :c_out].set(b)
            return w, bp

        # Padded node rows of h end up as relu(b1) != 0, which is harmless:
        # their adjacency columns are zero and the output is sliced to [:n].
        w1, b1 = fuse_weights(self.w1_rel, self.w1_root, self.b1,
                              fin, fpad, hid, hpad)
        h = graph_conv_layer(x_pad, adj, w1, b1, tm=tm, tk=tk, apply_relu=True)

        w2, b2 = fuse_weights(self.w2_rel, self.w2_root, self.b2,
                              hid, hpad, out, opad)
        y = graph_conv_layer(h, adj, w2, b2, tm=tm, tk=tk, apply_relu=False)
        return y[:n, :out]


def _reference_forward(model, x, edge_index):
    """Pure-JAX f32 reference (explicit HIGHEST precision matmuls)."""
    n = x.shape[0]
    adj = (jnp.zeros((n, n), jnp.float32)
           .at[edge_index[1], edge_index[0]].add(1.0))

    def mm(a, b):
        return jnp.dot(a, b, precision=jax.lax.Precision.HIGHEST)

    h = mm(adj, mm(x, model.w1_rel)) + mm(x, model.w1_root) + model.b1
    h = jnp.maximum(h, 0.0)
    return mm(adj, mm(h, model.w2_rel)) + mm(h, model.w2_root) + model.b2


if __name__ == "__main__":
    key = jax.random.PRNGKey(0)
    k_x, k_e, k_p = jax.random.split(key, 3)

    num_nodes = 32
    in_channels = 16
    hidden_channels = 32
    out_channels = 8
    num_edges = 64

    x = jax.random.normal(k_x, (num_nodes, in_channels), jnp.float32)
    edge_index = jax.random.randint(k_e, (2, num_edges), 0, num_nodes,
                                    jnp.int32)

    model = GraphConvEncoderPallas(k_p, in_channels, hidden_channels,
                                   out_channels)

    out = jax.block_until_ready(model(x, edge_index))

    ref = _reference_forward(model, x, edge_index)
    assert out.shape == (num_nodes, out_channels)
    err = float(jnp.max(jnp.abs(out - ref)))
    assert jnp.allclose(out, ref, atol=1e-3, rtol=1e-3), err

    print("KERNEL_OK")
</pallas_src>

<mosaic_0001>
module attributes {stable_mosaic.version = 11 : i64} {
  func.func @_project_kernel(%arg0: i32, %arg1: memref<128x128xf32, #tpu.memory_space<vmem>>, %arg2: memref<128x256xf32, #tpu.memory_space<vmem>>, %arg3: memref<1x128xf32, #tpu.memory_space<vmem>>, %arg4: memref<128x128xbf16, #tpu.memory_space<vmem>>, %arg5: memref<128x128xbf16, #tpu.memory_space<vmem>>, %arg6: memref<128x128xf32, #tpu.memory_space<vmem>>) attributes {dimension_semantics = [#tpu.dimension_semantics<parallel>], iteration_bounds = array<i64: 1>, scalar_prefetch = 0 : i64, scratch_operands = 0 : i64, tpu.core_type = #tpu.core_type<tc>, window_params = [{transform_indices = @transform_0, window_bounds = array<i64: 128, 128>}, {pipeline_mode = #tpu.pipeline_mode<synchronous>, transform_indices = @transform_1, window_bounds = array<i64: 128, 256>}, {pipeline_mode = #tpu.pipeline_mode<synchronous>, transform_indices = @transform_2, window_bounds = array<i64: 1, 128>}, {transform_indices = @transform_3, window_bounds = array<i64: 128, 128>}, {transform_indices = @transform_4, window_bounds = array<i64: 128, 128>}, {transform_indices = @transform_5, window_bounds = array<i64: 128, 128>}]} {
    %c0 = arith.constant 0 : index
    %c0_0 = arith.constant 0 : index
    %0 = vector.load %arg1[%c0, %c0_0] : memref<128x128xf32, #tpu.memory_space<vmem>>, vector<128x128xf32>
    %c0_1 = arith.constant 0 : index
    %c0_2 = arith.constant 0 : index
    %1 = vector.load %arg2[%c0_1, %c0_2] : memref<128x256xf32, #tpu.memory_space<vmem>>, vector<128x256xf32>
    %cst = arith.constant dense<0.000000e+00> : vector<128x256xf32>
    %2 = tpu.matmul %0, %1, %cst {dimension_numbers = #tpu.dot_dimension_numbers<[1], [0], [0], [1], [0, 0, 1, 1], [], []>} : vector<128x128xf32>, vector<128x256xf32>, vector<128x256xf32> -> vector<128x256xf32>
    %3 = vector.extract_strided_slice %2 {offsets = [0, 0], sizes = [128, 128], strides = [1, 1]} : vector<128x256xf32> to vector<128x128xf32>
    %4 = arith.truncf %3 : vector<128x128xf32> to vector<128x128xbf16>
    %c0_3 = arith.constant 0 : index
    %c0_4 = arith.constant 0 : index
    %5 = vector.load %arg4[%c0_3, %c0_4] : memref<128x128xbf16, #tpu.memory_space<vmem>>, vector<128x128xbf16>
    tpu.vector_store %arg4[%c0_3, %c0_4], %4 {strides = array<i32>} : memref<128x128xbf16, #tpu.memory_space<vmem>>, vector<128x128xbf16>,
    %6 = arith.extf %4 : vector<128x128xbf16> to vector<128x128xf32>
    %7 = arith.subf %3, %6 : vector<128x128xf32>
    %8 = arith.truncf %7 : vector<128x128xf32> to vector<128x128xbf16>
    %c0_5 = arith.constant 0 : index
    %c0_6 = arith.constant 0 : index
    %9 = vector.load %arg5[%c0_5, %c0_6] : memref<128x128xbf16, #tpu.memory_space<vmem>>, vector<128x128xbf16>
    tpu.vector_store %arg5[%c0_5, %c0_6], %8 {strides = array<i32>} : memref<128x128xbf16, #tpu.memory_space<vmem>>, vector<128x128xbf16>,
    %10 = vector.extract_strided_slice %2 {offsets = [0, 128], sizes = [128, 128], strides = [1, 1]} : vector<128x256xf32> to vector<128x128xf32>
    %c0_7 = arith.constant 0 : index
    %c0_8 = arith.constant 0 : index
    %11 = vector.load %arg3[%c0_7, %c0_8] : memref<1x128xf32, #tpu.memory_space<vmem>>, vector<1x128xf32>
    %12 = vector.broadcast %11 : vector<1x128xf32> to vector<128x128xf32>
    %13 = arith.addf %10, %12 : vector<128x128xf32>
    %c0_9 = arith.constant 0 : index
    %c0_10 = arith.constant 0 : index
    %14 = vector.load %arg6[%c0_9, %c0_10] : memref<128x128xf32, #tpu.memory_space<vmem>>, vector<128x128xf32>
    tpu.vector_store %arg6[%c0_9, %c0_10], %13 {strides = array<i32>} : memref<128x128xf32, #tpu.memory_space<vmem>>, vector<128x128xf32>,
    return
  }
  func.func @transform_0(%arg0: i32) -> (i32, i32) {
    %c0_i32 = arith.constant 0 : i32
    %c0_i32_0 = arith.constant 0 : i32
    return %arg0, %c0_i32 : i32, i32
  }
  func.func @transform_1(%arg0: i32) -> (i32, i32) {
    %c0_i32 = arith.constant 0 : i32
    %c0_i32_0 = arith.constant 0 : i32
    %c0_i32_1 = arith.constant 0 : i32
    return %c0_i32, %c0_i32_0 : i32, i32
  }
  func.func @transform_2(%arg0: i32) -> (i32, i32) {
    %c0_i32 = arith.constant 0 : i32
    %c0_i32_0 = arith.constant 0 : i32
    %c0_i32_1 = arith.constant 0 : i32
    return %c0_i32, %c0_i32_0 : i32, i32
  }
  func.func @transform_3(%arg0: i32) -> (i32, i32) {
    %c0_i32 = arith.constant 0 : i32
    %c0_i32_0 = arith.constant 0 : i32
    return %arg0, %c0_i32 : i32, i32
  }
  func.func @transform_4(%arg0: i32) -> (i32, i32) {
    %c0_i32 = arith.constant 0 : i32
    %c0_i32_0 = arith.constant 0 : i32
    return %arg0, %c0_i32 : i32, i32
  }
  func.func @transform_5(%arg0: i32) -> (i32, i32) {
    %c0_i32 = arith.constant 0 : i32
    %c0_i32_0 = arith.constant 0 : i32
    return %arg0, %c0_i32 : i32, i32
  }
}

</mosaic_0001>

<bundles_post_ra>
// kernel: tpu_custom_call.1
= control target key start
LH: loop header
LB: loop body
LE: loop exit
PB: predicated region body
PF: predicated region fallthrough
CT: control target
= control target key end

     0   :  { %11 = vsyncpa [#allocation3], 0  ;;  %s947_s0 = inlined_call_operand.hbm [shape: f32[128,128], index: 0, kind: input, shape index: {}]   ;;  %s948_s1 = inlined_call_operand.hbm [shape: f32[128,256], index: 1, kind: input, shape index: {}]   ;;  %s949_s2 = inlined_call_operand.vmem [shape: f32[1,128], index: 2, kind: input, shape index: {}]   ;;  %s950_s3 = inlined_call_operand.hbm [shape: bf16[128,128], index: 3, kind: output, shape index: {0}]   ;;  %s951_s4 = inlined_call_operand.hbm [shape: bf16[128,128], index: 4, kind: output, shape index: {1}]   ;;  %s952_s5 = inlined_call_operand.hbm [shape: f32[128,128], index: 5, kind: output, shape index: {2}]  }
   0x1   :  { %12 = vsyncpa [#allocation6], 0 }
   0x2   :  { %13 = vsyncpa [#allocation4], 0 }
   0x3   :  { %14 = vsyncpa [#allocation9], 0  ;;  %s847_s18 = smov [#allocation2]  }
   0x4   :  { %s20_s19 = sshll.u32 %s847_s18, 4  ;;  %s21_s19 = int_to_ptr.vmem [resolvable:$true] %s20_s19 }
   0x5   :  { %s747_s20 = scalar_lea.vmem %s21_s19, 2048  ;;  %p752_p1 = scmp.lt.s32.totalorder %s21_s19, %s21_s19 }
   0x6   :  { %p748_p0 = scmp.ne.s32.totalorder %s21_s19, %s747_s20  ;;  %p753_p2 = scmp.lt.s32.totalorder %s747_s20, %s747_s20 }
   0x8   :  { %p754_p3 = por %p753_p2, %p752_p1 }
   0xa   :  { %p755_p4 = pnand %p754_p3, %p748_p0 }
   0xc   :  { %758 = shalt.err (!%p755_p4)
}
   0xd   :  { %s848_s21 = smov 128   ;;  %s849_s22 = smov 8  }
   0xe   :  { %26 = dma.hbm_to_vmem [thread:$0]  %s947_s0, 2048, %s21_s19, [#allocation3], %s848_s21, %s848_s21, %s849_s22  }
   0xf   :  { %s850_s25 = smov [#allocation5]  }
  0x10   :  { %s32_s26 = sshll.u32 %s850_s25, 4  ;;  %s33_s26 = int_to_ptr.vmem [resolvable:$true] %s32_s26 }
  0x11   :  { %s767_s27 = scalar_lea.vmem %s33_s26, 4096  ;;  %p772_p6 = scmp.lt.s32.totalorder %s33_s26, %s33_s26 }
  0x12   :  { %p768_p5 = scmp.ne.s32.totalorder %s33_s26, %s767_s27  ;;  %p773_p7 = scmp.lt.s32.totalorder %s767_s27, %s767_s27 }
  0x14   :  { %p774_p8 = por %p773_p7, %p772_p6 }
  0x16   :  { %p775_p9 = pnand %p774_p8, %p768_p5 }
  0x18   :  { %778 = shalt.err (!%p775_p9)
}
  0x19   :  { %s851_s28 = smov 256   ;;  %s852_s29 = smov 16  }
  0x1a   :  { %38 = dma.hbm_to_vmem [thread:$0]  %s948_s1, 4096, %s33_s26, [#allocation6], %s851_s28, %s851_s28, %s852_s29  }
  0x1b   :  { %839 = dma.done.wait [#allocation3], 2048  }
  0x1c   :  { %840 = vsyncadd [#allocation3], 4294965248 }
  0x1d   :  { %841 = dma.done.wait [#allocation6], 4096  }
  0x1e   :  { %842 = vsyncadd [#allocation6], 4294963200  ;;  %v853_v0 = vmov 0.0   ;;  %v94_v1 = vld [vmem:[#allocation5 + $0xf8] sm:$0xff]  ;;  %v93_v2 = vld [vmem:[#allocation5 + $0xf0] sm:$0xff]  ;;  %s855_s8 = smov [#allocation8]  }
  0x1f   :  { %159 = vmatprep.mubr.f32.mxu0 %v853_v0  ;;  %207 = vmatprep.mubr.f32.mxu1 %v853_v0  ;;  %v92_v3 = vld [vmem:[#allocation5 + $0xe8] sm:$0xff]  ;;  %v91_v4 = vld [vmem:[#allocation5 + $0xe0] sm:$0xff]  ;;  %v90_v5 = vld [vmem:[#allocation5 + $0xd8] sm:$0xff]  ;;  %s504_s9 = sshll.u32 %s855_s8, 4  ;;  %s505_s9 = int_to_ptr.vmem [resolvable:$true] %s504_s9 }
  0x20   :  { %95 = vmatprep.subr.mxu0 %v94_v1  ;;  %695 = vmatprep.subr.mxu1 %v94_v1  ;;  %v89_v6 = vld [vmem:[#allocation5 + $0xd0] sm:$0xff]  ;;  %v88_v7 = vld [vmem:[#allocation5 + $0xc8] sm:$0xff]  ;;  %v87_v8 = vld [vmem:[#allocation5 + $0xc0] sm:$0xff] }
  0x21   :  { %96 = vmatpush1.msra.mxu0 %v93_v2  ;;  %711 = vmatpush1.msra.mxu1 %v93_v2  ;;  %v86_v9 = vld [vmem:[#allocation5 + $0xb8] sm:$0xff]  ;;  %v85_v10 = vld [vmem:[#allocation5 + $0xb0] sm:$0xff]  ;;  %v84_v11 = vld [vmem:[#allocation5 + $0xa8] sm:$0xff] }
  0x22   :  { %97 = vmatprep.subr.mxu0 %v92_v3  ;;  %696 = vmatprep.subr.mxu1 %v92_v3  ;;  %v83_v12 = vld [vmem:[#allocation5 + $0xa0] sm:$0xff]  ;;  %v82_v13 = vld [vmem:[#allocation5 + $0x98] sm:$0xff]  ;;  %v81_v14 = vld [vmem:[#allocation5 + $0x90] sm:$0xff] }
  0x23   :  { %98 = vmatpush1.msra.mxu0 %v91_v4  ;;  %712 = vmatpush1.msra.mxu1 %v91_v4  ;;  %v80_v15 = vld [vmem:[#allocation5 + $0x88] sm:$0xff]  ;;  %v79_v16 = vld [vmem:[#allocation5 + $0x80] sm:$0xff]  ;;  %v78_v17 = vld [vmem:[#allocation5 + $0x78] sm:$0xff] }
  0x24   :  { %99 = vmatprep.subr.mxu0 %v90_v5  ;;  %697 = vmatprep.subr.mxu1 %v90_v5  ;;  %v77_v18 = vld [vmem:[#allocation5 + $0x70] sm:$0xff]  ;;  %v76_v19 = vld [vmem:[#allocation5 + $0x68] sm:$0xff]  ;;  %v75_v20 = vld [vmem:[#allocation5 + $0x60] sm:$0xff] }
  0x25   :  { %100 = vmatpush1.msra.mxu0 %v89_v6  ;;  %713 = vmatpush1.msra.mxu1 %v89_v6  ;;  %v74_v21 = vld [vmem:[#allocation5 + $0x58] sm:$0xff]  ;;  %v73_v22 = vld [vmem:[#allocation5 + $0x50] sm:$0xff]  ;;  %v72_v23 = vld [vmem:[#allocation5 + $0x48] sm:$0xff] }
  0x26   :  { %101 = vmatprep.subr.mxu0 %v88_v7  ;;  %698 = vmatprep.subr.mxu1 %v88_v7  ;;  %v71_v24 = vld [vmem:[#allocation5 + $0x40] sm:$0xff]  ;;  %v70_v25 = vld [vmem:[#allocation5 + $0x38] sm:$0xff]  ;;  %v69_v26 = vld [vmem:[#allocation5 + $0x30] sm:$0xff] }
  0x27   :  { %102 = vmatpush1.msra.mxu0 %v87_v8  ;;  %714 = vmatpush1.msra.mxu1 %v87_v8  ;;  %v68_v27 = vld [vmem:[#allocation5 + $0x28] sm:$0xff]  ;;  %v67_v28 = vld [vmem:[#allocation5 + $0x20] sm:$0xff]  ;;  %v66_v29 = vld [vmem:[#allocation5 + $0x18] sm:$0xff] }
  0x28   :  { %103 = vmatprep.subr.mxu0 %v86_v9  ;;  %699 = vmatprep.subr.mxu1 %v86_v9  ;;  %v65_v30 = vld [vmem:[#allocation5 + $0x10] sm:$0xff]  ;;  %v64_v31 = vld [vmem:[#allocation5 + $0x8] sm:$0xff]  ;;  %v63_v32 = vld [vmem:[#allocation5] sm:$0xff] }
  0x29   :  { %104 = vmatpush1.msra.mxu0 %v85_v10  ;;  %715 = vmatpush1.msra.mxu1 %v85_v10  ;;  %v47_v33 = vld [vmem:[#allocation2] sm:$0xff]  ;;  %v48_v35 = vld [vmem:[#allocation2 + $0x8] sm:$0xff]  ;;  %v49_v37 = vld [vmem:[#allocation2 + $0x10] sm:$0xff] }
  0x2a   :  { %105 = vmatprep.subr.mxu0 %v84_v11  ;;  %700 = vmatprep.subr.mxu1 %v84_v11  ;;  %v55_v34 = vld [vmem:[#allocation2 + $0x40] sm:$0xff]  ;;  %v56_v36 = vld [vmem:[#allocation2 + $0x48] sm:$0xff]  ;;  %v57_v38 = vld [vmem:[#allocation2 + $0x50] sm:$0xff] }
  0x2b   :  { %106 = vmatpush1.msra.mxu0 %v83_v12  ;;  %716 = vmatpush1.msra.mxu1 %v83_v12  ;;  %v50_v39 = vld [vmem:[#allocation2 + $0x18] sm:$0xff]  ;;  %v51_v41 = vld [vmem:[#allocation2 + $0x20] sm:$0xff]  ;;  %v52_v43 = vld [vmem:[#allocation2 + $0x28] sm:$0xff] }
  0x2c   :  { %107 = vmatprep.subr.mxu0 %v82_v13  ;;  %701 = vmatprep.subr.mxu1 %v82_v13  ;;  %v58_v40 = vld [vmem:[#allocation2 + $0x58] sm:$0xff]  ;;  %v59_v42 = vld [vmem:[#allocation2 + $0x60] sm:$0xff]  ;;  %v60_v44 = vld [vmem:[#allocation2 + $0x68] sm:$0xff] }
  0x2d   :  { %108 = vmatpush1.msra.mxu0 %v81_v14  ;;  %717 = vmatpush1.msra.mxu1 %v81_v14  ;;  %v53_v45 = vld [vmem:[#allocation2 + $0x30] sm:$0xff]  ;;  %v54_v47 = vld [vmem:[#allocation2 + $0x38] sm:$0xff]  ;;  %v917_v51 = vld [vmem:[%s949_s2] ss:$0 sm:$0xff]  ;;  %s854_s2 = smov [#allocation7]  }
  0x2e   :  { %109 = vmatprep.subr.mxu0 %v80_v15  ;;  %702 = vmatprep.subr.mxu1 %v80_v15  ;;  %v61_v46 = vld [vmem:[#allocation2 + $0x70] sm:$0xff]  ;;  %v62_v48 = vld [vmem:[#allocation2 + $0x78] sm:$0xff]  ;;  %s492_s7 = sshll.u32 %s854_s2, 4  ;;  %s493_s7 = int_to_ptr.vmem [resolvable:$true] %s492_s7 }
  0x2f   :  { %110 = vmatpush1.msra.mxu0 %v79_v16  ;;  %718 = vmatpush1.msra.mxu1 %v79_v16  ;;  %s779_s10 = scalar_lea.vmem %s493_s7, 1024  ;;  %p784_p11 = scmp.lt.s32.totalorder %s493_s7, %s493_s7 }
  0x30   :  { %111 = vmatprep.subr.mxu0 %v78_v17  ;;  %703 = vmatprep.subr.mxu1 %v78_v17  ;;  %p780_p10 = scmp.ne.s32.totalorder %s493_s7, %s779_s10  ;;  %p785_p12 = scmp.lt.s32.totalorder %s779_s10, %s779_s10 }
  0x31   :  { %112 = vmatpush1.msra.mxu0 %v77_v18  ;;  %719 = vmatpush1.msra.mxu1 %v77_v18 }
  0x32   :  { %113 = vmatprep.subr.mxu0 %v76_v19  ;;  %704 = vmatprep.subr.mxu1 %v76_v19  ;;  %p786_p13 = por %p785_p12, %p784_p11 }
  0x33   :  { %114 = vmatpush1.msra.mxu0 %v75_v20  ;;  %720 = vmatpush1.msra.mxu1 %v75_v20 }
  0x34   :  { %115 = vmatprep.subr.mxu0 %v74_v21  ;;  %705 = vmatprep.subr.mxu1 %v74_v21  ;;  %p787_p0 = pnand %p786_p13, %p780_p10 }
  0x35   :  { %116 = vmatpush1.msra.mxu0 %v73_v22  ;;  %721 = vmatpush1.msra.mxu1 %v73_v22 }
  0x36   :  { %117 = vmatprep.subr.mxu0 %v72_v23  ;;  %706 = vmatprep.subr.mxu1 %v72_v23 }
  0x37   :  { %118 = vmatpush1.msra.mxu0 %v71_v24  ;;  %722 = vmatpush1.msra.mxu1 %v71_v24 }
  0x38   :  { %119 = vmatprep.subr.mxu0 %v70_v25  ;;  %707 = vmatprep.subr.mxu1 %v70_v25 }
  0x39   :  { %120 = vmatpush1.msra.mxu0 %v69_v26  ;;  %723 = vmatpush1.msra.mxu1 %v69_v26 }
  0x3a   :  { %121 = vmatprep.subr.mxu0 %v68_v27  ;;  %708 = vmatprep.subr.mxu1 %v68_v27 }
  0x3b   :  { %122 = vmatpush1.msra.mxu0 %v67_v28  ;;  %724 = vmatpush1.msra.mxu1 %v67_v28 }
  0x3c   :  { %123 = vmatprep.subr.mxu0 %v66_v29  ;;  %709 = vmatprep.subr.mxu1 %v66_v29 }
  0x3d   :  { %124 = vmatpush1.msra.mxu0 %v65_v30  ;;  %725 = vmatpush1.msra.mxu1 %v65_v30 }
  0x3e   :  { %125 = vmatprep.subr.mxu0 %v64_v31  ;;  %710 = vmatprep.subr.mxu1 %v64_v31 }
  0x3f   :  { %126 = vmatpush1.msra.mxu0 %v63_v32  ;;  %726 = vmatpush1.msra.mxu1 %v63_v32 }
  0x40   :  { %160 = vmatmul.mubr.f32.vlgmr.msra.gmra.mxu0 %v47_v33  ;;  %208 = vmatmul.mubr.f32.vlgmr.msra.gmra.mxu1 %v55_v34 }
  0x41   :  { %165 = vmatprep.mubr.f32.mxu0 %v853_v0  ;;  %213 = vmatprep.mubr.f32.mxu1 %v853_v0 }
  0x44   :  { %166 = vmatmul.mubr.f32.gmra.mxu0 %v48_v35  ;;  %214 = vmatmul.mubr.f32.gmra.mxu1 %v56_v36 }
  0x45   :  { %171 = vmatprep.mubr.f32.mxu0 %v853_v0  ;;  %219 = vmatprep.mubr.f32.mxu1 %v853_v0 }
  0x48   :  { %172 = vmatmul.mubr.f32.gmra.mxu0 %v49_v37  ;;  %220 = vmatmul.mubr.f32.gmra.mxu1 %v57_v38 }
  0x49   :  { %177 = vmatprep.mubr.f32.mxu0 %v853_v0  ;;  %225 = vmatprep.mubr.f32.mxu1 %v853_v0 }
  0x4c   :  { %178 = vmatmul.mubr.f32.gmra.mxu0 %v50_v39  ;;  %226 = vmatmul.mubr.f32.gmra.mxu1 %v58_v40 }
  0x4d   :  { %183 = vmatprep.mubr.f32.mxu0 %v853_v0  ;;  %231 = vmatprep.mubr.f32.mxu1 %v853_v0 }
  0x50   :  { %184 = vmatmul.mubr.f32.gmra.mxu0 %v51_v41  ;;  %232 = vmatmul.mubr.f32.gmra.mxu1 %v59_v42 }
  0x51   :  { %189 = vmatprep.mubr.f32.mxu0 %v853_v0  ;;  %237 = vmatprep.mubr.f32.mxu1 %v853_v0 }
  0x54   :  { %190 = vmatmul.mubr.f32.gmra.mxu0 %v52_v43  ;;  %238 = vmatmul.mubr.f32.gmra.mxu1 %v60_v44 }
  0x55   :  { %195 = vmatprep.mubr.f32.mxu0 %v853_v0  ;;  %243 = vmatprep.mubr.f32.mxu1 %v853_v0 }
  0x58   :  { %196 = vmatmul.mubr.f32.gmra.mxu0 %v53_v45  ;;  %244 = vmatmul.mubr.f32.gmra.mxu1 %v61_v46 }
  0x59   :  { %201 = vmatprep.mubr.f32.mxu0 %v853_v0  ;;  %249 = vmatprep.mubr.f32.mxu1 %v853_v0 }
  0x5c   :  { %202 = vmatmul.mubr.f32.gmra.mxu0 %v54_v47  ;;  %250 = vmatmul.mubr.f32.gmra.mxu1 %v62_v48 }
 0x100   :  { %v161_v49 = vpop.f32.mrf.mxu0  ;;  %v209_v50 = vpop.f32.mrf.mxu1 }
 0x102   :  { %v163_v52 = vpop.f32.mrf.mxu0  ;;  %v211_v53 = vpop.f32.mrf.mxu1 }
 0x103   :  { %v455_v54 = vadd.f32 %v917_v51, %v163_v52  ;;  %v463_v55 = vadd.f32 %v917_v51, %v211_v53 }
 0x104   :  { %v167_v56 = vpop.f32.mrf.mxu0  ;;  %v215_v57 = vpop.f32.mrf.mxu1 }
 0x105   :  { %471 = vst [vmem:[#allocation10] sm:$0xff] %v455_v54  ;;  %479 = vst [vmem:[#allocation10 + $0x40] sm:$0xff] %v463_v55  ;;  %v256_v58 = vpack.c.bf16 %v167_v56, %v161_v49  ;;  %v260_v59 = vpack.c.bf16 %v215_v57, %v209_v50 }
 0x106   :  { %v169_v60 = vpop.f32.mrf.mxu0  ;;  %v217_v61 = vpop.f32.mrf.mxu1 }
 0x107   :  { %605 = vst [vmem:[#allocation7] sm:$0xff] %v256_v58   ;;  %v336_v62 = vunpack.c.l.bf16 %v256_v58  ;;  %v337_v63 = vunpack.c.h.bf16 %v256_v58  ;;  %684 = vst [vmem:[#allocation7 + $0x20] sm:$0xff] %v260_v59   ;;  %v344_v0 = vunpack.c.l.bf16 %v260_v59  ;;  %v345_v1 = vunpack.c.h.bf16 %v260_v59 }
 0x108   :  { %v456_v2 = vadd.f32 %v917_v51, %v169_v60  ;;  %v464_v3 = vadd.f32 %v917_v51, %v217_v61  ;;  %v173_v4 = vpop.f32.mrf.mxu0  ;;  %v221_v5 = vpop.f32.mrf.mxu1 }
 0x109   :  { %v352_v6 = vsub.f32 %v161_v49, %v336_v62  ;;  %v353_v7 = vsub.f32 %v167_v56, %v337_v63  ;;  %v360_v8 = vsub.f32 %v209_v50, %v344_v0  ;;  %v361_v9 = vsub.f32 %v215_v57, %v345_v1 }
 0x10a   :  { %472 = vst [vmem:[#allocation10 + $0x8] sm:$0xff] %v456_v2  ;;  %480 = vst [vmem:[#allocation10 + $0x48] sm:$0xff] %v464_v3  ;;  %v175_v10 = vpop.f32.mrf.mxu0  ;;  %v223_v11 = vpop.f32.mrf.mxu1 }
 0x10b   :  { %v644_v12 = vpack.c.bf16 %v353_v7, %v352_v6  ;;  %v664_v13 = vpack.c.bf16 %v361_v9, %v360_v8  ;;  %v457_v14 = vadd.f32 %v917_v51, %v175_v10  ;;  %v465_v15 = vadd.f32 %v917_v51, %v223_v11 }
 0x10c   :  { %v179_v16 = vpop.f32.mrf.mxu0  ;;  %v227_v17 = vpop.f32.mrf.mxu1 }
 0x10d   :  { %645 = vst [vmem:[#allocation8] sm:$0xff] %v644_v12   ;;  %691 = vst [vmem:[#allocation8 + $0x20] sm:$0xff] %v664_v13   ;;  %v257_v18 = vpack.c.bf16 %v179_v16, %v173_v4  ;;  %v261_v19 = vpack.c.bf16 %v227_v17, %v221_v5 }
 0x10e   :  { %473 = vst [vmem:[#allocation10 + $0x10] sm:$0xff] %v457_v14  ;;  %481 = vst [vmem:[#allocation10 + $0x50] sm:$0xff] %v465_v15  ;;  %v181_v20 = vpop.f32.mrf.mxu0  ;;  %v229_v21 = vpop.f32.mrf.mxu1 }
 0x10f   :  { %681 = vst [vmem:[#allocation7 + $0x8] sm:$0xff] %v257_v18   ;;  %v338_v22 = vunpack.c.l.bf16 %v257_v18  ;;  %v339_v23 = vunpack.c.h.bf16 %v257_v18  ;;  %685 = vst [vmem:[#allocation7 + $0x28] sm:$0xff] %v261_v19   ;;  %v346_v24 = vunpack.c.l.bf16 %v261_v19  ;;  %v347_v25 = vunpack.c.h.bf16 %v261_v19 }
 0x110   :  { %v458_v26 = vadd.f32 %v917_v51, %v181_v20  ;;  %v466_v27 = vadd.f32 %v917_v51, %v229_v21  ;;  %v185_v28 = vpop.f32.mrf.mxu0  ;;  %v233_v29 = vpop.f32.mrf.mxu1 }
 0x111   :  { %v354_v30 = vsub.f32 %v173_v4, %v338_v22  ;;  %v355_v31 = vsub.f32 %v179_v16, %v339_v23  ;;  %v362_v32 = vsub.f32 %v221_v5, %v346_v24  ;;  %v363_v33 = vsub.f32 %v227_v17, %v347_v25 }
 0x112   :  { %474 = vst [vmem:[#allocation10 + $0x18] sm:$0xff] %v458_v26  ;;  %482 = vst [vmem:[#allocation10 + $0x58] sm:$0xff] %v466_v27  ;;  %v187_v34 = vpop.f32.mrf.mxu0  ;;  %v235_v35 = vpop.f32.mrf.mxu1 }
 0x113   :  { %v649_v36 = vpack.c.bf16 %v355_v31, %v354_v30  ;;  %v669_v37 = vpack.c.bf16 %v363_v33, %v362_v32  ;;  %v459_v38 = vadd.f32 %v917_v51, %v187_v34  ;;  %v467_v39 = vadd.f32 %v917_v51, %v235_v35 }
 0x114   :  { %v191_v40 = vpop.f32.mrf.mxu0  ;;  %v239_v41 = vpop.f32.mrf.mxu1 }
 0x115   :  { %688 = vst [vmem:[#allocation8 + $0x8] sm:$0xff] %v649_v36   ;;  %692 = vst [vmem:[#allocation8 + $0x28] sm:$0xff] %v669_v37   ;;  %v258_v42 = vpack.c.bf16 %v191_v40, %v185_v28  ;;  %v262_v43 = vpack.c.bf16 %v239_v41, %v233_v29 }
 0x116   :  { %475 = vst [vmem:[#allocation10 + $0x20] sm:$0xff] %v459_v38  ;;  %483 = vst [vmem:[#allocation10 + $0x60] sm:$0xff] %v467_v39  ;;  %v193_v44 = vpop.f32.mrf.mxu0  ;;  %v241_v45 = vpop.f32.mrf.mxu1 }
 0x117   :  { %682 = vst [vmem:[#allocation7 + $0x10] sm:$0xff] %v258_v42   ;;  %v340_v46 = vunpack.c.l.bf16 %v258_v42  ;;  %v341_v47 = vunpack.c.h.bf16 %v258_v42  ;;  %686 = vst [vmem:[#allocation7 + $0x30] sm:$0xff] %v262_v43   ;;  %v348_v48 = vunpack.c.l.bf16 %v262_v43  ;;  %v349_v49 = vunpack.c.h.bf16 %v262_v43 }
 0x118   :  { %v460_v50 = vadd.f32 %v917_v51, %v193_v44  ;;  %v468_v52 = vadd.f32 %v917_v51, %v241_v45  ;;  %v197_v53 = vpop.f32.mrf.mxu0  ;;  %v245_v54 = vpop.f32.mrf.mxu1 }
 0x119   :  { %v356_v55 = vsub.f32 %v185_v28, %v340_v46  ;;  %v357_v56 = vsub.f32 %v191_v40, %v341_v47  ;;  %v364_v57 = vsub.f32 %v233_v29, %v348_v48  ;;  %v365_v58 = vsub.f32 %v239_v41, %v349_v49 }
 0x11a   :  { %476 = vst [vmem:[#allocation10 + $0x28] sm:$0xff] %v460_v50  ;;  %484 = vst [vmem:[#allocation10 + $0x68] sm:$0xff] %v468_v52  ;;  %v199_v59 = vpop.f32.mrf.mxu0  ;;  %v247_v60 = vpop.f32.mrf.mxu1 }
 0x11b   :  { %v654_v61 = vpack.c.bf16 %v357_v56, %v356_v55  ;;  %v674_v62 = vpack.c.bf16 %v365_v58, %v364_v57  ;;  %v461_v63 = vadd.f32 %v917_v51, %v199_v59  ;;  %v469_v0 = vadd.f32 %v917_v51, %v247_v60 }
 0x11c   :  { %v203_v1 = vpop.f32.mrf.mxu0  ;;  %v251_v2 = vpop.f32.mrf.mxu1 }
 0x11d   :  { %689 = vst [vmem:[#allocation8 + $0x10] sm:$0xff] %v654_v61   ;;  %693 = vst [vmem:[#allocation8 + $0x30] sm:$0xff] %v674_v62   ;;  %v259_v3 = vpack.c.bf16 %v203_v1, %v197_v53  ;;  %v263_v4 = vpack.c.bf16 %v251_v2, %v245_v54 }
 0x11e   :  { %477 = vst [vmem:[#allocation10 + $0x30] sm:$0xff] %v461_v63  ;;  %485 = vst [vmem:[#allocation10 + $0x70] sm:$0xff] %v469_v0  ;;  %v205_v5 = vpop.f32.mrf.mxu0  ;;  %v253_v6 = vpop.f32.mrf.mxu1 }
 0x11f   :  { %683 = vst [vmem:[#allocation7 + $0x18] sm:$0xff] %v259_v3   ;;  %v342_v7 = vunpack.c.l.bf16 %v259_v3  ;;  %v343_v8 = vunpack.c.h.bf16 %v259_v3  ;;  %687 = vst [vmem:[#allocation7 + $0x38] sm:$0xff] %v263_v4   ;;  %v350_v9 = vunpack.c.l.bf16 %v263_v4  ;;  %v351_v10 = vunpack.c.h.bf16 %v263_v4 }
 0x120   :  { %v462_v11 = vadd.f32 %v917_v51, %v205_v5  ;;  %v470_v12 = vadd.f32 %v917_v51, %v253_v6 }
 0x121   :  { %790 = shalt.err (!%p787_p0)
}
 0x122   :  { %s856_s11 = smov 64   ;;  %s857_s12 = smov 4   ;;  %v358_v13 = vsub.f32 %v197_v53, %v342_v7  ;;  %v359_v14 = vsub.f32 %v203_v1, %v343_v8  ;;  %v366_v15 = vsub.f32 %v245_v54, %v350_v9  ;;  %v367_v16 = vsub.f32 %v251_v2, %v351_v10  ;;  %478 = vst [vmem:[#allocation10 + $0x38] sm:$0xff] %v462_v11 }
 0x123   :  { %498 = dma.vmem_to_hbm [thread:$0]  %s493_s7, 1024, %s950_s3, [#allocation4], %s856_s11, %s856_s11, %s857_s12   ;;  %486 = vst [vmem:[#allocation10 + $0x78] sm:$0xff] %v470_v12 }
 0x124   :  { %s858_s15 = smov [#allocation10]   ;;  %v659_v51 = vpack.c.bf16 %v359_v14, %v358_v13  ;;  %v679_v17 = vpack.c.bf16 %v367_v16, %v366_v15  ;;  %s799_s17 = scalar_lea.vmem %s505_s9, 1024 }
 0x125   :  { %s516_s16 = sshll.u32 %s858_s15, 4  ;;  %p800_p1 = scmp.ne.s32.totalorder %s505_s9, %s799_s17  ;;  %s517_s16 = int_to_ptr.vmem [resolvable:$true] %s516_s16 }
 0x126   :  { %690 = vst [vmem:[#allocation8 + $0x18] sm:$0xff] %v659_v51   ;;  %694 = vst [vmem:[#allocation8 + $0x38] sm:$0xff] %v679_v17   ;;  %p804_p2 = scmp.lt.s32.totalorder %s505_s9, %s505_s9  ;;  %p805_p3 = scmp.lt.s32.totalorder %s799_s17, %s799_s17 }
 0x128   :  { %p806_p4 = por %p805_p3, %p804_p2 }
 0x12a   :  { %p807_p5 = pnand %p806_p4, %p800_p1 }
 0x12c   :  { %810 = shalt.err (!%p807_p5)
}
 0x12d   :  { %510 = dma.vmem_to_hbm [thread:$0]  %s505_s9, 1024, %s951_s4, [#allocation9], %s856_s11, %s856_s11, %s857_s12  }
 0x12e   :  { %s819_s19 = scalar_lea.vmem %s517_s16, 2048  ;;  %p824_p7 = scmp.lt.s32.totalorder %s517_s16, %s517_s16 }
 0x12f   :  { %p820_p6 = scmp.ne.s32.totalorder %s517_s16, %s819_s19  ;;  %p825_p8 = scmp.lt.s32.totalorder %s819_s19, %s819_s19 }
 0x131   :  { %p826_p9 = por %p825_p8, %p824_p7 }
 0x133   :  { %p827_p10 = pnand %p826_p9, %p820_p6 }
 0x135   :  { %830 = shalt.err (!%p827_p10)
}
 0x136   :  { %522 = dma.vmem_to_hbm [thread:$0]  %s517_s16, 2048, %s952_s5, [#allocation9], %s848_s21, %s848_s21, %s849_s22  }
 0x137   :  { %843 = dma.done.wait [#allocation4], 1024  }
 0x138   :  { %844 = vsyncadd [#allocation4], 4294966272 }
 0x139   :  { %845 = dma.done.wait [#allocation9], 3072  }
 0x13a   :  { %846 = vsyncadd [#allocation9], 4294964224 }
 0x13b   :  { %532 = vsyncpa [#allocation3], 1 }
 0x13c   :  { %533 = vsyncpa [#allocation6], 1 }
 0x13d   :  { %534 = vsyncpa [#allocation4], 1 }
 0x13e   :  { %535 = vsyncpa [#allocation9], 1 }

</bundles_post_ra>
